<compile_context>
chip_gen: v5e
topology: v5e:2x2
jax: 0.10.0
libtpu: 0.0.40
codegen_flags: <defaults>
</compile_context>

<pallas_src>
import jax
import jax.numpy as jnp
from jax.experimental import pallas as pl
from jax.experimental.pallas import tpu as pltpu


def mlp_kernel(x_ref, p_ref, o_ref):
    # x_ref: [3, TB]  (features on sublanes, batch on lanes) -- VMEM
    # p_ref: [11]     packed params in SMEM:
    #                 p[2k+j] = w1[k, j]  (k in 0..2, j in 0..1)
    #                 p[6+j]  = b1[j]
    #                 p[8+j]  = w2[j, 0]
    #                 p[10]   = b2[0]
    # o_ref: [1, TB]  lane-dense output row -- VMEM
    x = x_ref[...]                     # [3, TB]
    x0 = x[0:1, :]                     # [1, TB]
    x1 = x[1:2, :]
    x2 = x[2:3, :]

    # Hidden layer: h_j = sum_k x_k * w1[k, j] + b1[j]   (unrolled VPU FMAs)
    h0 = x0 * p_ref[0] + x1 * p_ref[2] + x2 * p_ref[4] + p_ref[6]
    h1 = x0 * p_ref[1] + x1 * p_ref[3] + x2 * p_ref[5] + p_ref[7]

    # ReLU
    a0 = jnp.maximum(h0, 0.0)
    a1 = jnp.maximum(h1, 0.0)

    # Output layer: o = a0 * w2[0] + a1 * w2[1] + b2
    o = a0 * p_ref[8] + a1 * p_ref[9] + p_ref[10]
    o_ref[...] = o.astype(o_ref.dtype)


def mlp_forward(x, w1, b1, w2, b2, *, max_tb=8192):
    """x: [B, 3] float32 -> [B, 1] float32.

    w1: [3, 2] (transposed torch weight), b1: [2]
    w2: [2, 1] (transposed torch weight), b2: [1]
    """
    B = x.shape[0]

    # Lane tile: multiple of 128, no larger than needed, capped at max_tb.
    b128 = ((B + 127) // 128) * 128
    tb = min(max_tb, b128)
    n_blk = pl.cdiv(B, tb)
    Bp = n_blk * tb

    # Wrapper-side layout plumbing: batch onto the lane axis, pad to a
    # multiple of the lane tile.
    x_t = x.T                                   # [3, B]
    if Bp != B:
        x_t = jnp.zeros((3, Bp), x.dtype).at[:, :B].set(x_t)

    # Pack all scalars into one flat SMEM param vector.
    params = jnp.concatenate([
        w1.reshape(-1).astype(jnp.float32),     # 6: w1[k, j] at 2k + j
        b1.astype(jnp.float32),                 # 2
        w2.reshape(-1).astype(jnp.float32),     # 2
        b2.astype(jnp.float32),                 # 1
    ])                                          # [11]

    out = pl.pallas_call(
        mlp_kernel,
        out_shape=jax.ShapeDtypeStruct((1, Bp), jnp.float32),
        grid=(n_blk,),
        in_specs=[
            pl.BlockSpec((3, tb), lambda i: (0, i)),                  # x tile
            pl.BlockSpec(memory_space=pltpu.MemorySpace.SMEM),        # params
        ],
        out_specs=pl.BlockSpec((1, tb), lambda i: (0, i)),
        compiler_params=pltpu.CompilerParams(
            dimension_semantics=("parallel",)),
    )(x_t, params)

    return out[0, :B].reshape(B, 1)


def init_params(key):
    """Deterministic init mirroring torch.nn.Linear default:
    U(-1/sqrt(fan_in), 1/sqrt(fan_in)) for weights and biases."""
    k1, k2, k3, k4 = jax.random.split(key, 4)
    bound1 = 1.0 / jnp.sqrt(3.0)  # fan_in = 3
    bound2 = 1.0 / jnp.sqrt(2.0)  # fan_in = 2
    # Stored already transposed: [in, out]
    w1 = jax.random.uniform(k1, (3, 2), jnp.float32, -bound1, bound1)
    b1 = jax.random.uniform(k2, (2,), jnp.float32, -bound1, bound1)
    w2 = jax.random.uniform(k3, (2, 1), jnp.float32, -bound2, bound2)
    b2 = jax.random.uniform(k4, (1,), jnp.float32, -bound2, bound2)
    return w1, b1, w2, b2


if __name__ == "__main__":
    key = jax.random.PRNGKey(0)
    kp, kx = jax.random.split(key)
    w1, b1, w2, b2 = init_params(kp)

    # Small batch that exercises both the multi-step grid (tb=128 -> 2 lane
    # tiles) and the pad-to-128 path. (The torch module runs on a single
    # 3-vector; here we batch it.)
    batch = 200
    x = jax.random.normal(kx, (batch, 3), dtype=jnp.float32)

    out = mlp_forward(x, w1, b1, w2, b2, max_tb=128)
    out = jax.block_until_ready(out)

    # Also run with the default (single large tile) configuration.
    out2 = jax.block_until_ready(mlp_forward(x, w1, b1, w2, b2))

    # Reference check in plain JAX (same math as the torch module).
    ref = jnp.maximum(x @ w1 + b1, 0.0) @ w2 + b2
    assert out.shape == (batch, 1)
    assert jnp.allclose(out, ref, atol=1e-5, rtol=1e-5)
    assert jnp.allclose(out2, ref, atol=1e-5, rtol=1e-5)

    print("KERNEL_OK")
</pallas_src>

<mosaic_0001>
module attributes {stable_mosaic.version = 11 : i64} {
  func.func @mlp_kernel(%arg0: i32, %arg1: memref<3x128xf32, #tpu.memory_space<vmem>>, %arg2: memref<11xf32, #tpu.memory_space<smem>>, %arg3: memref<1x128xf32, #tpu.memory_space<vmem>>) attributes {dimension_semantics = [#tpu.dimension_semantics<parallel>], iteration_bounds = array<i64: 2>, scalar_prefetch = 0 : i64, scratch_operands = 0 : i64, tpu.core_type = #tpu.core_type<tc>, window_params = [{transform_indices = @transform_0, window_bounds = array<i64: 3, 128>}, {transform_indices = @transform_1, window_bounds = array<i64: 11>}, {transform_indices = @transform_2, window_bounds = array<i64: 1, 128>}]} {
    %c0 = arith.constant 0 : index
    %c0_0 = arith.constant 0 : index
    %0 = vector.load %arg1[%c0, %c0_0] : memref<3x128xf32, #tpu.memory_space<vmem>>, vector<3x128xf32>
    %1 = vector.extract_strided_slice %0 {offsets = [0, 0], sizes = [1, 128], strides = [1, 1]} : vector<3x128xf32> to vector<1x128xf32>
    %2 = vector.extract_strided_slice %0 {offsets = [1, 0], sizes = [1, 128], strides = [1, 1]} : vector<3x128xf32> to vector<1x128xf32>
    %3 = vector.extract_strided_slice %0 {offsets = [2, 0], sizes = [1, 128], strides = [1, 1]} : vector<3x128xf32> to vector<1x128xf32>
    %c0_1 = arith.constant 0 : index
    %4 = memref.load %arg2[%c0_1] : memref<11xf32, #tpu.memory_space<smem>>
    %5 = vector.broadcast %4 : f32 to vector<1x128xf32>
    %6 = arith.mulf %1, %5 : vector<1x128xf32>
    %c2 = arith.constant 2 : index
    %7 = memref.load %arg2[%c2] : memref<11xf32, #tpu.memory_space<smem>>
    %8 = vector.broadcast %7 : f32 to vector<1x128xf32>
    %9 = arith.mulf %2, %8 : vector<1x128xf32>
    %10 = arith.addf %6, %9 : vector<1x128xf32>
    %c4 = arith.constant 4 : index
    %11 = memref.load %arg2[%c4] : memref<11xf32, #tpu.memory_space<smem>>
    %12 = vector.broadcast %11 : f32 to vector<1x128xf32>
    %13 = arith.mulf %3, %12 : vector<1x128xf32>
    %14 = arith.addf %10, %13 : vector<1x128xf32>
    %c6 = arith.constant 6 : index
    %15 = memref.load %arg2[%c6] : memref<11xf32, #tpu.memory_space<smem>>
    %16 = vector.broadcast %15 : f32 to vector<1x128xf32>
    %17 = arith.addf %14, %16 : vector<1x128xf32>
    %c1 = arith.constant 1 : index
    %18 = memref.load %arg2[%c1] : memref<11xf32, #tpu.memory_space<smem>>
    %19 = vector.broadcast %18 : f32 to vector<1x128xf32>
    %20 = arith.mulf %1, %19 : vector<1x128xf32>
    %c3 = arith.constant 3 : index
    %21 = memref.load %arg2[%c3] : memref<11xf32, #tpu.memory_space<smem>>
    %22 = vector.broadcast %21 : f32 to vector<1x128xf32>
    %23 = arith.mulf %2, %22 : vector<1x128xf32>
    %24 = arith.addf %20, %23 : vector<1x128xf32>
    %c5 = arith.constant 5 : index
    %25 = memref.load %arg2[%c5] : memref<11xf32, #tpu.memory_space<smem>>
    %26 = vector.broadcast %25 : f32 to vector<1x128xf32>
    %27 = arith.mulf %3, %26 : vector<1x128xf32>
    %28 = arith.addf %24, %27 : vector<1x128xf32>
    %c7 = arith.constant 7 : index
    %29 = memref.load %arg2[%c7] : memref<11xf32, #tpu.memory_space<smem>>
    %30 = vector.broadcast %29 : f32 to vector<1x128xf32>
    %31 = arith.addf %28, %30 : vector<1x128xf32>
    %cst = arith.constant 0.000000e+00 : f32
    %32 = vector.broadcast %cst : f32 to vector<1x128xf32>
    %33 = arith.maximumf %17, %32 : vector<1x128xf32>
    %cst_2 = arith.constant 0.000000e+00 : f32
    %34 = vector.broadcast %cst_2 : f32 to vector<1x128xf32>
    %35 = arith.maximumf %31, %34 : vector<1x128xf32>
    %c8 = arith.constant 8 : index
    %36 = memref.load %arg2[%c8] : memref<11xf32, #tpu.memory_space<smem>>
    %37 = vector.broadcast %36 : f32 to vector<1x128xf32>
    %38 = arith.mulf %33, %37 : vector<1x128xf32>
    %c9 = arith.constant 9 : index
    %39 = memref.load %arg2[%c9] : memref<11xf32, #tpu.memory_space<smem>>
    %40 = vector.broadcast %39 : f32 to vector<1x128xf32>
    %41 = arith.mulf %35, %40 : vector<1x128xf32>
    %42 = arith.addf %38, %41 : vector<1x128xf32>
    %c10 = arith.constant 10 : index
    %43 = memref.load %arg2[%c10] : memref<11xf32, #tpu.memory_space<smem>>
    %44 = vector.broadcast %43 : f32 to vector<1x128xf32>
    %45 = arith.addf %42, %44 : vector<1x128xf32>
    %c0_3 = arith.constant 0 : index
    %c0_4 = arith.constant 0 : index
    %46 = vector.load %arg3[%c0_3, %c0_4] : memref<1x128xf32, #tpu.memory_space<vmem>>, vector<1x128xf32>
    tpu.vector_store %arg3[%c0_3, %c0_4], %45 {strides = array<i32>} : memref<1x128xf32, #tpu.memory_space<vmem>>, vector<1x128xf32>,
    return
  }
  func.func @transform_0(%arg0: i32) -> (i32, i32) {
    %c0_i32 = arith.constant 0 : i32
    %c0_i32_0 = arith.constant 0 : i32
    return %c0_i32, %arg0 : i32, i32
  }
  func.func @transform_1(%arg0: i32) -> i32 {
    %c0_i32 = arith.constant 0 : i32
    %c0_i32_0 = arith.constant 0 : i32
    return %c0_i32 : i32
  }
  func.func @transform_2(%arg0: i32) -> (i32, i32) {
    %c0_i32 = arith.constant 0 : i32
    %c0_i32_0 = arith.constant 0 : i32
    return %c0_i32, %arg0 : i32, i32
  }
}

</mosaic_0001>

<bundles_post_ra>
// kernel: tpu_custom_call.1
= control target key start
LH: loop header
LB: loop body
LE: loop exit
PB: predicated region body
PF: predicated region fallthrough
CT: control target
= control target key end

     0   :  { %7 = vsyncpa [#allocation3], 0  ;;  %s669_s0 = inlined_call_operand.hbm [shape: f32[3,256], index: 0, kind: input, shape index: {}]   ;;  %s670_s1 = inlined_call_operand.hbm [shape: f32[11], index: 1, kind: input, shape index: {}]   ;;  %s671_s2 = inlined_call_operand.hbm [shape: f32[1,256], index: 2, kind: output, shape index: {}]  }
   0x1   :  { %9 = vsyncpa [#allocation3 + $0x1], 0 }
   0x2   :  { %10 = vsyncpa [#allocation5], 0 }
   0x3   :  { %11 = vsyncpa [#allocation4], 0 }
   0x4   :  { %13 = vsyncpa [#allocation4 + $0x1], 0  ;;  %s530_s9 = smov 0   ;;  %s532_s10 = smov 0  }
   0x5   :  { %s534_s11 = smov 0   ;;  %s536_s12 = smov 0  }
   0x6 LB: > { %s551_s13 = sadd.s32 4294967295, %s512_s12   ;;  %s319_s14 = sadd.s32 4294967294, %s512_s12   ;;  %s512_s12 = sphi %s536_s12, %s681_s12   ;;  %s508_s11 = sphi %s534_s11, %s680_s11   ;;  %s504_s10 = sphi %s532_s10, %s679_s10   ;;  %s500_s9 = sphi %s530_s9, %s678_s9  }
   0x7   : > { %p39_p0 = scmp.ne.s32.totalorder %s504_s10, %s500_s9  ;;  %p40_p1 = scmp.eq.s32.totalorder %s551_s13, 0 }
   0x8   : > { %p84_p2 = scmp.eq.s32.totalorder %s551_s13, 1  ;;  %p90_p3 = scmp.eq.s32.totalorder %s319_s14, 1 }
   0x9   : > { %p560_p4 = por %p40_p1, %p39_p0  ;;  %p320_p5 = scmp.ge.s32.totalorder %s512_s12, 1 }
   0xa   : > { %p565_p6 = por %p90_p3, %p39_p0  ;;  %p97_p7 = scmp.lt.s32.totalorder %s512_s12, 3 }
   0xb   : > { %s109_s19 = sshll.u32 %s670_s1, 4  ;;  %s581_s21 = sadd.s32 1, %s512_s12   ;;  %s110_s19 = int_to_ptr.hbm [resolvable:$true] %s109_s19 }
   0xc   : > { %p573_p8 = pnand %p320_p5, %p97_p7  ;;  %s23_s22 = ssub.s32 %s512_s12, %s581_s21 }
   0xd   : > { %p24_p12 = scmp.eq.s32.totalorder %s23_s22, 0  ;;  %s26_s23 = sadd.s32 1, %s508_s11 }
   0xe   : > { %p348_p10 = pneg %p573_p8  ;;  %p33_p13 = scmp.ne.s32.totalorder %s508_s11, %s504_s10 }
   0xf   : > { %s514_s24 = smov [#allocation6]   ;;  %p34_p0 = scmp.eq.s32.totalorder %s512_s12, 0 }
  0x10   : > { %p349_p11 = pnand %p348_p10, %p40_p1  ;;  %p596_p3 = por %p84_p2, %p33_p13 }
  0x11   : > { %s591_s25 = scalar_select %p24_p12, %s508_s11, %s26_s23  }
  0x12   : > { %351 = dma.hbm_to_smem (!%p349_p11), %s110_s19, 16, %s514_s24, [#allocation5]  }
  0x13   : > { %s120_s27 = sand.u32 1, %s508_s11   ;;  %p35_p5 = por %p34_p0, %p33_p13 }
  0x14   : > { %p361_p7 = scmp.lt.s32.totalorder %s512_s12, 2  ;;  %s323_s28 = sshll.u32 %s120_s27, 2 }
  0x15   : > { %s324_s29 = sshll.u32 %s512_s12, 2  ;;  %s124_s6 = scalar_lea.vmem [#allocation2], %s323_s28 }
  0x16   : > { %s128_s4 = scalar_lea.hbm %s669_s0, %s324_s29  ;;  %s132_s7 = sshll.u32 %s124_s6, 4  ;;  %s133_s7 = int_to_ptr.vmem [resolvable:$true] %s132_s7 }
  0x17   : > { %s130_s5 = sshll.u32 %s128_s4, 4  ;;  %p606_p10 = pnand %p361_p7, %p35_p5  ;;  %s131_s5 = int_to_ptr.hbm [resolvable:$true] %s130_s5 }
  0x18   : > { %s121_s14 = scalar_lea.sflag [#allocation3], %s120_s27  ;;  %s412_s17 = sshra.s32 %s131_s5, 4  ;;  %s413_s17 = int_to_ptr.hbm [resolvable:$true] %s412_s17 }
  0x19   : > { %s414_s18 = scalar_lea.hbm %s413_s17, 4  ;;  %p416_p11 = pneg %p606_p10 }
  0x1a   : > { %p415_p2 = scmp.ne.s32.totalorder %s413_s17, %s414_s18  ;;  %s419_s23 = scalar_lea.hbm %s669_s0, 8 }
  0x1b   : > { %p420_p0 = scmp.lt.s32.totalorder %s413_s17, %s669_s0  ;;  %p421_p5 = scmp.lt.s32.totalorder %s419_s23, %s414_s18 }
  0x1c   : > { %p417_p12 = pnand %p416_p11, %p415_p2 }
  0x1d   : > { %p422_p7 = por %p421_p5, %p420_p0 }
  0x1e   : > { %p418_p13 = pneg %p417_p12 }
  0x20   : > { %p423_p9 = pnand %p422_p7, %p418_p13 }
  0x22   : > { %426 = shalt.err (!%p423_p9)
}
  0x23   : > { %355 = dma.hbm_to_vmem [thread:$0]  (!%p606_p10), %s131_s5, 64, %s133_s7, %s121_s14  }
  0x24   : > { %141 = sbr.rel (%p573_p8) target bundleno = 79 (0x4f), region = 28  ;;  %s623_s27 = sand.u32 (!%p573_p8), 1, %s504_s10  }
  0x25   : > { %s326_s29 = sshll.u32 (!%p573_p8), %s623_s27, 2  ;;  %s144_s30 = scalar_lea.sflag (!%p573_p8), [#allocation3], %s623_s27 }
  0x26   : > { %s147_s3 = scalar_lea.vmem (!%p573_p8), [#allocation2], %s326_s29 }
  0x29   : > { %487 = dma.done.wait (%p560_p4), %s144_s30, 64  }
  0x2a   : > { %489 = vsyncadd (%p560_p4), %s144_s30, 4294967232 }
  0x2b   : > { %491 = dma.done.wait (%p40_p1), [#allocation5], 16  }
  0x2c   : > { %493 = vsyncadd (%p40_p1), [#allocation5], 4294967280 }
  0x2d   : > { %158 = sfence }
  0x2e   : > { %s175_s20 = sld [smem:[#allocation6]]  ;;  %v174_v0 = vld [vmem:[%s147_s3] sm:$0x7]  ;;  %s237_s24 = scalar_lea.hbm %s671_s2, %s551_s13 }
  0x2f   : > { %s328_s4 = sld [smem:[#allocation6 + $0x2]]  ;;  %s173_s28 = scalar_lea.vmem [#allocation7], %s623_s27 }
  0x30   : > { %s329_s5 = sld [smem:[#allocation6 + $0x4]]  ;;  %s239_s29 = sshll.u32 %s173_s28, 4  ;;  %s240_s29 = int_to_ptr.vmem [resolvable:$true] %s239_s29 }
  0x31   : > { %s330_s6 = sld [smem:[#allocation6 + $0x6]]  ;;  %s241_s30 = sshll.u32 %s237_s24, 4  ;;  %s242_s30 = int_to_ptr.hbm [resolvable:$true] %s241_s30 }
  0x32   : > { %s331_s7 = sld [smem:[#allocation6 + $0x1]]  ;;  %s229_s3 = scalar_lea.sflag [#allocation4], %s623_s27 }
  0x33   : > { %s332_s8 = sld [smem:[#allocation6 + $0x3]] }
  0x34   : > { %v176_v1 = vstv %s175_s20  ;;  %s333_s14 = sld [smem:[#allocation6 + $0x5]]  ;;  %s456_s20 = sshra.s32 %s242_s30, 4  ;;  %s457_s20 = int_to_ptr.hbm [resolvable:$true] %s456_s20 }
  0x35   : > { %v179_v2 = vstv %s328_s4  ;;  %v177_v3 = vmul.f32 %v176_v1, %v174_v0  ;;  %s334_s15 = sld [smem:[#allocation6 + $0x7]]  ;;  %s458_s4 = scalar_lea.hbm %s457_s20, 1 }
  0x36   : > { %v180_v4 = vmul.f32 %v179_v2, %v174_v0  ;;  %v186_v5 = vstv %s329_s5  ;;  %s335_s17 = sld [smem:[#allocation6 + $0x8]]  ;;  %p459_p1 = scmp.ne.s32.totalorder %s457_s20, %s458_s4 }
  0x37   : > { %v187_v6 = vmul.f32 %v186_v5, %v174_v0  ;;  %v193_v15 = vstv %s330_s6  ;;  %s336_s18 = sld [smem:[#allocation6 + $0x9]]  ;;  %s462_s6 = scalar_lea.hbm %s671_s2, 2 }
  0x38   : > { %v182_v7 = vrot.slane %v180_v4, 1  ;;  %v196_v8 = vstv %s331_s7  ;;  %s337_s19 = sld [smem:[#allocation6 + $0xa]]  ;;  %p460_p4 = pnand %p459_p1, %p596_p3 }
  0x39   : > { %v189_v9 = vrot.slane %v187_v6, 2  ;;  %v199_v10 = vstv %s332_s8  ;;  %v197_v12 = vmul.f32 %v196_v8, %v174_v0  ;;  %p463_p9 = scmp.lt.s32.totalorder %s457_s20, %s671_s2  ;;  %p464_p10 = scmp.lt.s32.totalorder %s462_s6, %s458_s4 }
  0x3a   : > { %v184_v11 = vadd.f32 %v182_v7, %v177_v3  ;;  %v200_v13 = vmul.f32 %v199_v10, %v174_v0  ;;  %v206_v14 = vstv %s333_s14  ;;  %p461_p8 = pneg %p460_p4 }
  0x3b   : > { %v207_v16 = vmul.f32 %v206_v14, %v174_v0  ;;  %v213_v22 = vstv %s334_s15  ;;  %p465_p2 = por %p464_p10, %p463_p9 }
  0x3c   : > { %v191_v17 = vadd.f32 %v189_v9, %v184_v11  ;;  %v202_v18 = vrot.slane %v200_v13, 1  ;;  %v218_v25 = vstv %s335_s17 }
  0x3d   : > { %v209_v19 = vrot.slane %v207_v16, 2  ;;  %v221_v27 = vstv %s336_s18  ;;  %p466_p11 = pnand %p465_p2, %p461_p8 }
  0x3e   : > { %v194_v20 = vadd.f32 %v193_v15, %v191_v17  ;;  %v204_v21 = vadd.f32 %v202_v18, %v197_v12  ;;  %v225_v31 = vstv %s337_s19 }
  0x40   : > { %v211_v23 = vadd.f32 %v209_v19, %v204_v21  ;;  %v215_v24 = vmax.f32 %v194_v20, 0.0 }
  0x42   : > { %v214_v26 = vadd.f32 %v213_v22, %v211_v23  ;;  %v219_v29 = vmul.f32 %v218_v25, %v215_v24 }
  0x44   : > { %v216_v28 = vmax.f32 %v214_v26, 0.0 }
  0x46   : > { %v222_v30 = vmul.f32 %v221_v27, %v216_v28 }
  0x48   : > { %v223_v32 = vadd.f32 %v222_v30, %v219_v29 }
  0x4a   : > { %v226_v33 = vadd.f32 %v225_v31, %v223_v32 }
  0x4c   : > { %227 = vst [vmem:[%s173_s28] sm:$0x1] %v226_v33 }
  0x4d   : > { %469 = shalt.err (!%p466_p11)
}
  0x4e   : > { %346 = dma.vmem_to_hbm [thread:$0]  (%p596_p3), %s240_s29, 16, %s242_s30, %s229_s3  }
  0x4f PF: > { %s253_s27 = sand.u32 1, %s500_s9   ;;  %p677_p12 = scmp.ge.s32.totalorder %s512_s12, 2 }
  0x50   : > { %s254_s14 = scalar_lea.sflag [#allocation4], %s253_s27 }
  0x51   : > { %p357_p13 = pnand %p677_p12, %p565_p6 }
  0x53   : > { %p358_p0 = pneg %p357_p13 }
  0x55   : > { %495 = dma.done.wait (%p358_p0), %s254_s14, 16  }
  0x56   : > { %497 = vsyncadd (%p358_p0), %s254_s14, 4294967280  ;;  %p16_p5 = scmp.ge.s32.totalorder %s581_s21, 4   ;;  %s678_s9 = smov %s504_s10 }
  0x57   : > { %s679_s10 = smov %s508_s11  ;;  %s680_s11 = smov %s591_s25 }
  0x58   : > { %s681_s12 = smov %s581_s21  ;;  %18 = sbr.rel (!%p16_p5) target bundleno = 6 (0x6), region = 78 }
  0x5d   :  { %259 = vsyncpa [#allocation3], 1 }
  0x5e   :  { %261 = vsyncpa [#allocation3 + $0x1], 1 }
  0x5f   :  { %262 = vsyncpa [#allocation4], 1 }
  0x60   :  { %264 = vsyncpa [#allocation4 + $0x1], 1 }
  0x61   :  { %265 = vsyncpa [#allocation5], 1 }
  0x62   :  { %267 = vsyncpa [#allocation5 + $0x1], 1 }

</bundles_post_ra>
